<compile_context>
chip_gen: v7x
topology: tpu7x:2x2x1
jax: 0.10.0
libtpu: 0.0.40
codegen_flags: <defaults>
</compile_context>

<pallas_src>
import functools

import jax
import jax.numpy as jnp
from jax import lax
from jax.experimental import pallas as pl
from jax.experimental.pallas import tpu as pltpu


def _round_up(x, m):
    return ((x + m - 1) // m) * m


def actor_critic_kernel(x_ref, w1_ref, b1_ref, wh_ref, bh_ref, out_ref, *,
                        num_actions, out_w, pack):
    x = x_ref[...]                                                  # (TB, S)

    # Shared first layer + ReLU (hidden dim zero-padded to a 128 multiple).
    h = jnp.dot(x, w1_ref[...], preferred_element_type=jnp.float32) + b1_ref[...]
    h = jnp.maximum(h, 0.0)                                         # (TB, Hp)

    # Fused heads (out_w lanes): [0:A] actor logits, [A] critic value, rest 0.
    logits = jnp.dot(h, wh_ref[...], preferred_element_type=jnp.float32) + bh_ref[...]

    col = lax.broadcasted_iota(jnp.int32, logits.shape, 1)
    actor_mask = col < num_actions

    # Numerically stable, EXACT softmax over the actor columns only.
    masked = jnp.where(actor_mask, logits, -1e30)
    m = jnp.max(masked, axis=-1, keepdims=True)                     # (TB, 1)
    e = jnp.exp(masked - m)                                         # 0 at masked cols
    denom = jnp.sum(e, axis=-1, keepdims=True)
    probs = e / denom

    # [probs | value | zeros], out_w lanes per batch row.
    slab = jnp.where(actor_mask, probs,
                     jnp.where(col == num_actions, logits, 0.0))    # (TB, out_w)

    # Pack `pack` row-groups into each 128-lane output row so only the useful
    # bytes are DMA'd back to HBM:
    #   out[r, g*out_w + j] = slab[g*rows + r, j],   rows = TB // pack
    rows = slab.shape[0] // pack
    for g in range(pack):
        out_ref[:, g * out_w:(g + 1) * out_w] = slab[g * rows:(g + 1) * rows, :]


def prepare_params(params):
    """One-time fusion/padding of the (in,out)-layout params for the kernel.

    Returns {'w1': (S, Hp), 'b1': (1, Hp), 'wh': (Hp, out_w), 'bh': (1, out_w)}
    where Hp = round_up(hidden, 128), out_w = pow2 >= action_dim + 1 (min 8),
    and the fused head columns are [0:A]=actor, [A]=critic, rest zero.
    """
    w1 = jnp.asarray(params["w1"], jnp.float32)
    b1 = jnp.asarray(params["b1"], jnp.float32).reshape(1, -1)
    wa = jnp.asarray(params["wa"], jnp.float32)
    ba = jnp.asarray(params["ba"], jnp.float32).reshape(1, -1)
    wc = jnp.asarray(params["wc"], jnp.float32)
    bc = jnp.asarray(params["bc"], jnp.float32).reshape(1, -1)

    S, H = w1.shape
    A = wa.shape[1]
    Hp = _round_up(H, 128)
    if A + 1 <= 128:
        out_w = max(8, int(pl.next_power_of_2(A + 1)))
    else:
        out_w = _round_up(A + 1, 128)

    w1p = jnp.zeros((S, Hp), jnp.float32).at[:, :H].set(w1)
    b1p = jnp.zeros((1, Hp), jnp.float32).at[:, :H].set(b1)
    whp = (jnp.zeros((Hp, out_w), jnp.float32)
           .at[:H, :A].set(wa)
           .at[:H, A:A + 1].set(wc))
    bhp = (jnp.zeros((1, out_w), jnp.float32)
           .at[:, :A].set(ba)
           .at[:, A:A + 1].set(bc))
    return {"w1": w1p, "b1": b1p, "wh": whp, "bh": bhp}


@functools.partial(jax.jit, static_argnames=("num_actions", "tile_b_max"))
def actor_critic_forward(x, prep, *, num_actions, tile_b_max=2048):
    """x: (B, state_dim) f32.  prep: output of prepare_params()."""
    B, S = x.shape
    Hp = prep["w1"].shape[1]
    out_w = prep["wh"].shape[1]
    A = num_actions
    pack = 128 // out_w if (out_w <= 128 and 128 % out_w == 0) else 1
    lane_w = out_w * pack

    # Batch tiling: multiple of 128 (keeps the packed row-groups sublane
    # aligned), big enough that the per-tile DMA dwarfs per-step overhead, and
    # split in two when it divides evenly so v7x's second TensorCore engages.
    Bp0 = _round_up(max(B, 1), 128)
    tile_b = min(tile_b_max, Bp0)
    if tile_b == Bp0 and Bp0 >= 256 and (Bp0 // 2) % 128 == 0:
        tile_b = Bp0 // 2
    Bp = _round_up(Bp0, tile_b)
    if Bp != B:
        x = jnp.pad(x, ((0, Bp - B), (0, 0)))

    grid = (Bp // tile_b,)

    cost = pl.CostEstimate(
        flops=2 * Bp * (S * Hp + Hp * out_w),
        transcendentals=Bp * out_w,
        bytes_accessed=4 * (Bp * S + Bp * out_w + S * Hp + Hp + Hp * out_w + out_w),
    )

    out = pl.pallas_call(
        functools.partial(actor_critic_kernel, num_actions=A, out_w=out_w,
                          pack=pack),
        out_shape=jax.ShapeDtypeStruct((Bp // pack, lane_w), jnp.float32),
        grid_spec=pltpu.PrefetchScalarGridSpec(
            num_scalar_prefetch=0,
            grid=grid,
            in_specs=[
                pl.BlockSpec((tile_b, S), lambda i: (i, 0)),     # x: batch tiled
                pl.BlockSpec((S, Hp), lambda i: (0, 0)),         # weights resident
                pl.BlockSpec((1, Hp), lambda i: (0, 0)),
                pl.BlockSpec((Hp, out_w), lambda i: (0, 0)),
                pl.BlockSpec((1, out_w), lambda i: (0, 0)),
            ],
            out_specs=pl.BlockSpec((tile_b // pack, lane_w), lambda i: (i, 0)),
        ),
        compiler_params=pltpu.CompilerParams(
            dimension_semantics=("parallel",),                   # megacore / v7x
        ),
        cost_estimate=cost,
    )(x, prep["w1"], prep["b1"], prep["wh"], prep["bh"])

    # Unpack: out[t*rows_b + r, g*out_w + j] holds batch row t*tile_b + g*rows_b + r.
    if pack > 1:
        nt = Bp // tile_b
        rows_b = tile_b // pack
        unp = (out.reshape(nt, rows_b, pack, out_w)
                  .transpose(0, 2, 1, 3)
                  .reshape(Bp, out_w))
    else:
        unp = out
    probs = unp[:B, :A]
    value = unp[:B, A:A + 1]
    return probs, value


def actor_critic_reference(x, params):
    """Pure-JAX reference matching the PyTorch module."""
    h = jnp.maximum(x @ params["w1"] + params["b1"], 0.0)
    probs = jax.nn.softmax(h @ params["wa"] + params["ba"], axis=-1)
    value = h @ params["wc"] + params["bc"]
    return probs, value


def init_params(key, state_dim, action_dim, hidden_dim=64):
    """Deterministic init mimicking PyTorch nn.Linear default (uniform +/- 1/sqrt(fan_in))."""
    ks = jax.random.split(key, 6)

    def uniform(k, shape, fan_in):
        bound = 1.0 / jnp.sqrt(float(fan_in))
        return jax.random.uniform(k, shape, jnp.float32, -bound, bound)

    return {
        # stored as (in_features, out_features) for x @ W
        "w1": uniform(ks[0], (state_dim, hidden_dim), state_dim),
        "b1": uniform(ks[1], (1, hidden_dim), state_dim),
        "wa": uniform(ks[2], (hidden_dim, action_dim), hidden_dim),
        "ba": uniform(ks[3], (1, action_dim), hidden_dim),
        "wc": uniform(ks[4], (hidden_dim, 1), hidden_dim),
        "bc": uniform(ks[5], (1, 1), hidden_dim),
    }


if __name__ == "__main__":
    batch = 8
    state_dim = 16
    action_dim = 6
    hidden_dim = 64

    key = jax.random.PRNGKey(0)
    k_x, k_p = jax.random.split(key)

    x = jax.random.normal(k_x, (batch, state_dim), dtype=jnp.float32)
    params = init_params(k_p, state_dim, action_dim, hidden_dim)
    prep = prepare_params(params)          # one-time, outside the hot path

    probs, value = actor_critic_forward(x, prep, num_actions=action_dim)
    jax.block_until_ready((probs, value))

    ref_probs, ref_value = actor_critic_reference(x, params)

    # sanity: shapes match the PyTorch module; exact softmax -> rows sum to 1
    assert probs.shape == (batch, action_dim)
    assert value.shape == (batch, 1)
    assert bool(jnp.allclose(jnp.sum(probs, axis=-1), 1.0, atol=1e-5))
    assert bool(jnp.allclose(probs, ref_probs, atol=1e-3))
    assert bool(jnp.allclose(value, ref_value, atol=1e-3, rtol=1e-3))

    print("KERNEL_OK")
</pallas_src>

<mosaic_0001>
module attributes {stable_mosaic.version = 11 : i64} {
  func.func @actor_critic_kernel(%arg0: i32, %arg1: memref<128x16xf32, #tpu.memory_space<vmem>>, %arg2: memref<16x128xf32, #tpu.memory_space<vmem>>, %arg3: memref<1x128xf32, #tpu.memory_space<vmem>>, %arg4: memref<128x8xf32, #tpu.memory_space<vmem>>, %arg5: memref<1x8xf32, #tpu.memory_space<vmem>>, %arg6: memref<8x128xf32, #tpu.memory_space<vmem>>) attributes {dimension_semantics = [#tpu.dimension_semantics<parallel>], iteration_bounds = array<i64: 1>, scalar_prefetch = 0 : i64, scratch_operands = 0 : i64, tpu.core_type = #tpu.core_type<tc>, window_params = [{transform_indices = @transform_0, window_bounds = array<i64: 128, 16>}, {pipeline_mode = #tpu.pipeline_mode<synchronous>, transform_indices = @transform_1, window_bounds = array<i64: 16, 128>}, {pipeline_mode = #tpu.pipeline_mode<synchronous>, transform_indices = @transform_2, window_bounds = array<i64: 1, 128>}, {pipeline_mode = #tpu.pipeline_mode<synchronous>, transform_indices = @transform_3, window_bounds = array<i64: 128, 8>}, {pipeline_mode = #tpu.pipeline_mode<synchronous>, transform_indices = @transform_4, window_bounds = array<i64: 1, 8>}, {transform_indices = @transform_5, window_bounds = array<i64: 8, 128>}]} {
    %c0 = arith.constant 0 : index
    %c0_0 = arith.constant 0 : index
    %0 = vector.load %arg1[%c0, %c0_0] : memref<128x16xf32, #tpu.memory_space<vmem>>, vector<128x16xf32>
    %c0_1 = arith.constant 0 : index
    %c0_2 = arith.constant 0 : index
    %1 = vector.load %arg2[%c0_1, %c0_2] : memref<16x128xf32, #tpu.memory_space<vmem>>, vector<16x128xf32>
    %cst = arith.constant dense<0.000000e+00> : vector<128x128xf32>
    %2 = tpu.matmul %0, %1, %cst {dimension_numbers = #tpu.dot_dimension_numbers<[1], [0], [0], [1], [0, 0, 1, 1], [], []>} : vector<128x16xf32>, vector<16x128xf32>, vector<128x128xf32> -> vector<128x128xf32>
    %c0_3 = arith.constant 0 : index
    %c0_4 = arith.constant 0 : index
    %3 = vector.load %arg3[%c0_3, %c0_4] : memref<1x128xf32, #tpu.memory_space<vmem>>, vector<1x128xf32>
    %4 = vector.broadcast %3 : vector<1x128xf32> to vector<128x128xf32>
    %5 = arith.addf %2, %4 : vector<128x128xf32>
    %cst_5 = arith.constant 0.000000e+00 : f32
    %6 = vector.broadcast %cst_5 : f32 to vector<128x128xf32>
    %7 = arith.maximumf %5, %6 : vector<128x128xf32>
    %c0_6 = arith.constant 0 : index
    %c0_7 = arith.constant 0 : index
    %8 = vector.load %arg4[%c0_6, %c0_7] : memref<128x8xf32, #tpu.memory_space<vmem>>, vector<128x8xf32>
    %cst_8 = arith.constant dense<0.000000e+00> : vector<128x8xf32>
    %9 = tpu.matmul %7, %8, %cst_8 {dimension_numbers = #tpu.dot_dimension_numbers<[1], [0], [0], [1], [0, 0, 1, 1], [], []>} : vector<128x128xf32>, vector<128x8xf32>, vector<128x8xf32> -> vector<128x8xf32>
    %c0_9 = arith.constant 0 : index
    %c0_10 = arith.constant 0 : index
    %10 = vector.load %arg5[%c0_9, %c0_10] : memref<1x8xf32, #tpu.memory_space<vmem>>, vector<1x8xf32>
    %11 = vector.broadcast %10 : vector<1x8xf32> to vector<128x8xf32>
    %12 = arith.addf %9, %11 : vector<128x8xf32>
    %13 = tpu.iota {dimensions = array<i32: 1>} : vector<128x8xi32>
    %c6_i32 = arith.constant 6 : i32
    %14 = vector.broadcast %c6_i32 : i32 to vector<128x8xi32>
    %15 = arith.cmpi slt, %13, %14 : vector<128x8xi32>
    %cst_11 = arith.constant -1.000000e+30 : f32
    %16 = vector.broadcast %cst_11 : f32 to vector<128x8xf32>
    %17 = arith.select %15, %12, %16 : vector<128x8xi1>, vector<128x8xf32>
    %cst_12 = arith.constant dense<0xFF800000> : vector<128xf32>
    %18 = vector.multi_reduction <maximumf>, %17, %cst_12 [1] : vector<128x8xf32> to vector<128xf32>
    %19 = vector.shape_cast %18 : vector<128xf32> to vector<128x1xf32>
    %20 = vector.broadcast %19 : vector<128x1xf32> to vector<128x8xf32>
    %21 = arith.subf %17, %20 : vector<128x8xf32>
    %22 = math.exp %21 : vector<128x8xf32>
    %cst_13 = arith.constant dense<0.000000e+00> : vector<128xf32>
    %23 = vector.multi_reduction <add>, %22, %cst_13 [1] : vector<128x8xf32> to vector<128xf32>
    %24 = vector.shape_cast %23 : vector<128xf32> to vector<128x1xf32>
    %25 = vector.broadcast %24 : vector<128x1xf32> to vector<128x8xf32>
    %26 = arith.divf %22, %25 : vector<128x8xf32>
    %c6_i32_14 = arith.constant 6 : i32
    %27 = vector.broadcast %c6_i32_14 : i32 to vector<128x8xi32>
    %28 = arith.cmpi eq, %13, %27 : vector<128x8xi32>
    %cst_15 = arith.constant 0.000000e+00 : f32
    %29 = vector.broadcast %cst_15 : f32 to vector<128x8xf32>
    %30 = arith.select %28, %12, %29 : vector<128x8xi1>, vector<128x8xf32>
    %31 = arith.select %15, %26, %30 : vector<128x8xi1>, vector<128x8xf32>
    %32 = vector.extract_strided_slice %31 {offsets = [0, 0], sizes = [8, 8], strides = [1, 1]} : vector<128x8xf32> to vector<8x8xf32>
    %c0_16 = arith.constant 0 : index
    %c0_17 = arith.constant 0 : index
    %33 = vector.load %arg6[%c0_16, %c0_17] : memref<8x128xf32, #tpu.memory_space<vmem>>, vector<8x8xf32>
    tpu.vector_store %arg6[%c0_16, %c0_17], %32 {strides = array<i32>} : memref<8x128xf32, #tpu.memory_space<vmem>>, vector<8x8xf32>,
    %34 = vector.extract_strided_slice %31 {offsets = [8, 0], sizes = [8, 8], strides = [1, 1]} : vector<128x8xf32> to vector<8x8xf32>
    %c0_18 = arith.constant 0 : index
    %c8 = arith.constant 8 : index
    %35 = vector.load %arg6[%c0_18, %c8] : memref<8x128xf32, #tpu.memory_space<vmem>>, vector<8x8xf32>
    tpu.vector_store %arg6[%c0_18, %c8], %34 {strides = array<i32>} : memref<8x128xf32, #tpu.memory_space<vmem>>, vector<8x8xf32>,
    %36 = vector.extract_strided_slice %31 {offsets = [16, 0], sizes = [8, 8], strides = [1, 1]} : vector<128x8xf32> to vector<8x8xf32>
    %c0_19 = arith.constant 0 : index
    %c16 = arith.constant 16 : index
    %37 = vector.load %arg6[%c0_19, %c16] : memref<8x128xf32, #tpu.memory_space<vmem>>, vector<8x8xf32>
    tpu.vector_store %arg6[%c0_19, %c16], %36 {strides = array<i32>} : memref<8x128xf32, #tpu.memory_space<vmem>>, vector<8x8xf32>,
    %38 = vector.extract_strided_slice %31 {offsets = [24, 0], sizes = [8, 8], strides = [1, 1]} : vector<128x8xf32> to vector<8x8xf32>
    %c0_20 = arith.constant 0 : index
    %c24 = arith.constant 24 : index
    %39 = vector.load %arg6[%c0_20, %c24] : memref<8x128xf32, #tpu.memory_space<vmem>>, vector<8x8xf32>
    tpu.vector_store %arg6[%c0_20, %c24], %38 {strides = array<i32>} : memref<8x128xf32, #tpu.memory_space<vmem>>, vector<8x8xf32>,
    %40 = vector.extract_strided_slice %31 {offsets = [32, 0], sizes = [8, 8], strides = [1, 1]} : vector<128x8xf32> to vector<8x8xf32>
    %c0_21 = arith.constant 0 : index
    %c32 = arith.constant 32 : index
    %41 = vector.load %arg6[%c0_21, %c32] : memref<8x128xf32, #tpu.memory_space<vmem>>, vector<8x8xf32>
    tpu.vector_store %arg6[%c0_21, %c32], %40 {strides = array<i32>} : memref<8x128xf32, #tpu.memory_space<vmem>>, vector<8x8xf32>,
    %42 = vector.extract_strided_slice %31 {offsets = [40, 0], sizes = [8, 8], strides = [1, 1]} : vector<128x8xf32> to vector<8x8xf32>
    %c0_22 = arith.constant 0 : index
    %c40 = arith.constant 40 : index
    %43 = vector.load %arg6[%c0_22, %c40] : memref<8x128xf32, #tpu.memory_space<vmem>>, vector<8x8xf32>
    tpu.vector_store %arg6[%c0_22, %c40], %42 {strides = array<i32>} : memref<8x128xf32, #tpu.memory_space<vmem>>, vector<8x8xf32>,
    %44 = vector.extract_strided_slice %31 {offsets = [48, 0], sizes = [8, 8], strides = [1, 1]} : vector<128x8xf32> to vector<8x8xf32>
    %c0_23 = arith.constant 0 : index
    %c48 = arith.constant 48 : index
    %45 = vector.load %arg6[%c0_23, %c48] : memref<8x128xf32, #tpu.memory_space<vmem>>, vector<8x8xf32>
    tpu.vector_store %arg6[%c0_23, %c48], %44 {strides = array<i32>} : memref<8x128xf32, #tpu.memory_space<vmem>>, vector<8x8xf32>,
    %46 = vector.extract_strided_slice %31 {offsets = [56, 0], sizes = [8, 8], strides = [1, 1]} : vector<128x8xf32> to vector<8x8xf32>
    %c0_24 = arith.constant 0 : index
    %c56 = arith.constant 56 : index
    %47 = vector.load %arg6[%c0_24, %c56] : memref<8x128xf32, #tpu.memory_space<vmem>>, vector<8x8xf32>
    tpu.vector_store %arg6[%c0_24, %c56], %46 {strides = array<i32>} : memref<8x128xf32, #tpu.memory_space<vmem>>, vector<8x8xf32>,
    %48 = vector.extract_strided_slice %31 {offsets = [64, 0], sizes = [8, 8], strides = [1, 1]} : vector<128x8xf32> to vector<8x8xf32>
    %c0_25 = arith.constant 0 : index
    %c64 = arith.constant 64 : index
    %49 = vector.load %arg6[%c0_25, %c64] : memref<8x128xf32, #tpu.memory_space<vmem>>, vector<8x8xf32>
    tpu.vector_store %arg6[%c0_25, %c64], %48 {strides = array<i32>} : memref<8x128xf32, #tpu.memory_space<vmem>>, vector<8x8xf32>,
    %50 = vector.extract_strided_slice %31 {offsets = [72, 0], sizes = [8, 8], strides = [1, 1]} : vector<128x8xf32> to vector<8x8xf32>
    %c0_26 = arith.constant 0 : index
    %c72 = arith.constant 72 : index
    %51 = vector.load %arg6[%c0_26, %c72] : memref<8x128xf32, #tpu.memory_space<vmem>>, vector<8x8xf32>
    tpu.vector_store %arg6[%c0_26, %c72], %50 {strides = array<i32>} : memref<8x128xf32, #tpu.memory_space<vmem>>, vector<8x8xf32>,
    %52 = vector.extract_strided_slice %31 {offsets = [80, 0], sizes = [8, 8], strides = [1, 1]} : vector<128x8xf32> to vector<8x8xf32>
    %c0_27 = arith.constant 0 : index
    %c80 = arith.constant 80 : index
    %53 = vector.load %arg6[%c0_27, %c80] : memref<8x128xf32, #tpu.memory_space<vmem>>, vector<8x8xf32>
    tpu.vector_store %arg6[%c0_27, %c80], %52 {strides = array<i32>} : memref<8x128xf32, #tpu.memory_space<vmem>>, vector<8x8xf32>,
    %54 = vector.extract_strided_slice %31 {offsets = [88, 0], sizes = [8, 8], strides = [1, 1]} : vector<128x8xf32> to vector<8x8xf32>
    %c0_28 = arith.constant 0 : index
    %c88 = arith.constant 88 : index
    %55 = vector.load %arg6[%c0_28, %c88] : memref<8x128xf32, #tpu.memory_space<vmem>>, vector<8x8xf32>
    tpu.vector_store %arg6[%c0_28, %c88], %54 {strides = array<i32>} : memref<8x128xf32, #tpu.memory_space<vmem>>, vector<8x8xf32>,
    %56 = vector.extract_strided_slice %31 {offsets = [96, 0], sizes = [8, 8], strides = [1, 1]} : vector<128x8xf32> to vector<8x8xf32>
    %c0_29 = arith.constant 0 : index
    %c96 = arith.constant 96 : index
    %57 = vector.load %arg6[%c0_29, %c96] : memref<8x128xf32, #tpu.memory_space<vmem>>, vector<8x8xf32>
    tpu.vector_store %arg6[%c0_29, %c96], %56 {strides = array<i32>} : memref<8x128xf32, #tpu.memory_space<vmem>>, vector<8x8xf32>,
    %58 = vector.extract_strided_slice %31 {offsets = [104, 0], sizes = [8, 8], strides = [1, 1]} : vector<128x8xf32> to vector<8x8xf32>
    %c0_30 = arith.constant 0 : index
    %c104 = arith.constant 104 : index
    %59 = vector.load %arg6[%c0_30, %c104] : memref<8x128xf32, #tpu.memory_space<vmem>>, vector<8x8xf32>
    tpu.vector_store %arg6[%c0_30, %c104], %58 {strides = array<i32>} : memref<8x128xf32, #tpu.memory_space<vmem>>, vector<8x8xf32>,
    %60 = vector.extract_strided_slice %31 {offsets = [112, 0], sizes = [8, 8], strides = [1, 1]} : vector<128x8xf32> to vector<8x8xf32>
    %c0_31 = arith.constant 0 : index
    %c112 = arith.constant 112 : index
    %61 = vector.load %arg6[%c0_31, %c112] : memref<8x128xf32, #tpu.memory_space<vmem>>, vector<8x8xf32>
    tpu.vector_store %arg6[%c0_31, %c112], %60 {strides = array<i32>} : memref<8x128xf32, #tpu.memory_space<vmem>>, vector<8x8xf32>,
    %62 = vector.extract_strided_slice %31 {offsets = [120, 0], sizes = [8, 8], strides = [1, 1]} : vector<128x8xf32> to vector<8x8xf32>
    %c0_32 = arith.constant 0 : index
    %c120 = arith.constant 120 : index
    %63 = vector.load %arg6[%c0_32, %c120] : memref<8x128xf32, #tpu.memory_space<vmem>>, vector<8x8xf32>
    tpu.vector_store %arg6[%c0_32, %c120], %62 {strides = array<i32>} : memref<8x128xf32, #tpu.memory_space<vmem>>, vector<8x8xf32>,
    return
  }
  func.func @transform_0(%arg0: i32) -> (i32, i32) {
    %c0_i32 = arith.constant 0 : i32
    %c0_i32_0 = arith.constant 0 : i32
    return %arg0, %c0_i32 : i32, i32
  }
  func.func @transform_1(%arg0: i32) -> (i32, i32) {
    %c0_i32 = arith.constant 0 : i32
    %c0_i32_0 = arith.constant 0 : i32
    %c0_i32_1 = arith.constant 0 : i32
    return %c0_i32, %c0_i32_0 : i32, i32
  }
  func.func @transform_2(%arg0: i32) -> (i32, i32) {
    %c0_i32 = arith.constant 0 : i32
    %c0_i32_0 = arith.constant 0 : i32
    %c0_i32_1 = arith.constant 0 : i32
    return %c0_i32, %c0_i32_0 : i32, i32
  }
  func.func @transform_3(%arg0: i32) -> (i32, i32) {
    %c0_i32 = arith.constant 0 : i32
    %c0_i32_0 = arith.constant 0 : i32
    %c0_i32_1 = arith.constant 0 : i32
    return %c0_i32, %c0_i32_0 : i32, i32
  }
  func.func @transform_4(%arg0: i32) -> (i32, i32) {
    %c0_i32 = arith.constant 0 : i32
    %c0_i32_0 = arith.constant 0 : i32
    %c0_i32_1 = arith.constant 0 : i32
    return %c0_i32, %c0_i32_0 : i32, i32
  }
  func.func @transform_5(%arg0: i32) -> (i32, i32) {
    %c0_i32 = arith.constant 0 : i32
    %c0_i32_0 = arith.constant 0 : i32
    return %arg0, %c0_i32 : i32, i32
  }
}

</mosaic_0001>

<bundles_post_ra>
// kernel: actor_critic_forward.1
= control target key start
LH: loop header
LB: loop body
LE: loop exit
PB: predicated region body
PF: predicated region fallthrough
CT: control target
= control target key end

     0   :  { %vm45_vm0 = vcmask 130048   ;;  %vm442_vm3 = vcmask 64512   ;;  %s1031_s9 = smov 24   ;;  %s1032_s10 = smov 16   ;;  %vm657_vm4 = vcmask 130112   ;;  %vm663_vm5 = vcmask 195712   ;;  %s1578_s1 = inlined_call_operand.vmem [shape: f32[16,128], index: 1, kind: input, shape index: {}]   ;;  %s1579_s0 = inlined_call_operand.vmem [shape: f32[128,16], index: 0, kind: input, shape index: {}]   ;;  %s1580_s3 = inlined_call_operand.vmem [shape: f32[128,8], index: 3, kind: input, shape index: {}]   ;;  %s1581_s2 = inlined_call_operand.vmem [shape: f32[1,128], index: 2, kind: input, shape index: {}]   ;;  %s1582_s4 = inlined_call_operand.vmem [shape: f32[1,8], index: 4, kind: input, shape index: {}]   ;;  %s1583_s5 = inlined_call_operand.vmem [shape: f32[8,128], index: 5, kind: output, shape index: {}]  }
   0x1   :  { %v36_v0 = vld [vmem:[%s1578_s1] sm:$0xff]  ;;  %v37_v1 = vld [vmem:[%s1578_s1 + $0x8] sm:$0xff]  ;;  %v22_v5 = vld [vmem:[%s1579_s0 + $0x10] sm:$0xff]  ;;  %s1033_s11 = smov 40   ;;  %s1034_s12 = smov 32   ;;  %vm669_vm6 = vcmask 261312  }
   0x2   :  { %v20_v2 = vld [vmem:[%s1579_s0] sm:$0xff]  ;;  %v899_v3 = vpack.c.bf16 %v37_v1, %v36_v0  ;;  %v21_v4 = vld [vmem:[%s1579_s0 + $0x8] sm:$0xff]  ;;  %v257_v8 = vld [vmem:[%s1580_s3 + $0x10] sm:$0xff]  ;;  %s1035_s13 = smov 56   ;;  %s1036_s14 = smov 48   ;;  %vm675_vm7 = vcmask 326912  }
   0x3   :  { %819 = vmatprep.mubr.msk.f32.mxu0 %vm45_vm0, %v20_v2  ;;  %v255_v6 = vld [vmem:[%s1580_s3] sm:$0xff]  ;;  %v256_v7 = vld [vmem:[%s1580_s3 + $0x8] sm:$0xff]  ;;  %v258_v10 = vld [vmem:[%s1580_s3 + $0x18] sm:$0xff]  ;;  %s1037_s15 = smov 72   ;;  %s1038_s16 = smov 64   ;;  %vm681_vm8 = vcmask 392512  }
   0x4   :  { %900 = vmatprep.subr.bf16.mxu0 %v899_v3  ;;  %v903_v9 = vpack.c.bf16 %v256_v7, %v255_v6  ;;  %v23_v11 = vld [vmem:[%s1579_s0 + $0x18] sm:$0xff]  ;;  %v907_v12 = vpack.c.bf16 %v258_v10, %v257_v8  ;;  %v259_v13 = vld [vmem:[%s1580_s3 + $0x20] sm:$0xff]  ;;  %v260_v14 = vld [vmem:[%s1580_s3 + $0x28] sm:$0xff]  ;;  %s1039_s17 = smov 88   ;;  %s1040_s18 = smov 80   ;;  %vm687_vm9 = vcmask 458112  }
   0x5   :  { %902 = vmatpush3.bf16.msra.mxu0 %v899_v3  ;;  %v24_v15 = vld [vmem:[%s1579_s0 + $0x20] sm:$0xff]  ;;  %v911_v16 = vpack.c.bf16 %v260_v14, %v259_v13  ;;  %v25_v17 = vld [vmem:[%s1579_s0 + $0x28] sm:$0xff]  ;;  %v261_v18 = vld [vmem:[%s1580_s3 + $0x30] sm:$0xff]  ;;  %s1041_s19 = smov 104   ;;  %s1042_s20 = smov 96   ;;  %vm693_vm10 = vcmask 523712  }
   0x6   :  { %904 = vmatprep.subr.bf16.mxu0 %v903_v9  ;;  %935 = vmatprep.subr.bf16.mxu1 %v903_v9  ;;  %v262_v19 = vld [vmem:[%s1580_s3 + $0x38] sm:$0xff]  ;;  %v26_v20 = vld [vmem:[%s1579_s0 + $0x30] sm:$0xff]  ;;  %v263_v23 = vld [vmem:[%s1580_s3 + $0x40] sm:$0xff]  ;;  %s1043_s21 = smov 120   ;;  %s1044_s22 = smov 112   ;;  %vm699_vm11 = vcmask 589312  }
   0x7   :  { %943 = vmatpush3.bf16.msra.mxu1 %v903_v9  ;;  %v915_v21 = vpack.c.bf16 %v262_v19, %v261_v18  ;;  %v27_v22 = vld [vmem:[%s1579_s0 + $0x38] sm:$0xff]  ;;  %v264_v24 = vld [vmem:[%s1580_s3 + $0x48] sm:$0xff]  ;;  %v28_v25 = vld [vmem:[%s1579_s0 + $0x40] sm:$0xff]  ;;  %vm705_vm12 = vcmask 654912   ;;  %vm711_vm13 = vcmask 720512   ;;  %vm717_vm14 = vcmask 786112  }
   0x8   :  { %820 = vmatmul.mubr.msk.f32.vlgmr.msra.gmra.mrb[0].mxu0 %vm45_vm0, %v21_v4  ;;  %936 = vmatprep.subr.bf16.mxu1 %v907_v12  ;;  %v919_v26 = vpack.c.bf16 %v264_v24, %v263_v23  ;;  %v29_v27 = vld [vmem:[%s1579_s0 + $0x48] sm:$0xff]  ;;  %v265_v28 = vld [vmem:[%s1580_s3 + $0x50] sm:$0xff]  ;;  %v266_v29 = vld [vmem:[%s1580_s3 + $0x58] sm:$0xff]  ;;  %vm723_vm15 = vcmask 851712  }
   0x9   :  { %822 = vmatprep.mubr.msk.f32.mxu0 %vm45_vm0, %v22_v5  ;;  %906 = vmatpush3.bf16.msra.mxu0 %v903_v9  ;;  %v30_v30 = vld [vmem:[%s1579_s0 + $0x50] sm:$0xff]  ;;  %v923_v31 = vpack.c.bf16 %v266_v29, %v265_v28  ;;  %v31_v32 = vld [vmem:[%s1579_s0 + $0x58] sm:$0xff]  ;;  %v267_v33 = vld [vmem:[%s1580_s3 + $0x60] sm:$0xff]  ;;  %v423_v28 = vlaneseq }
   0xa   :  { %908 = vmatprep.subr.bf16.mxu0 %v907_v12  ;;  %v268_v34 = vld [vmem:[%s1580_s3 + $0x68] sm:$0xff]  ;;  %v32_v35 = vld [vmem:[%s1579_s0 + $0x60] sm:$0xff]  ;;  %v34_v38 = vld [vmem:[%s1579_s0 + $0x70] sm:$0xff] }
   0xb   :  { %944 = vmatpush3.bf16.msra.mxu1 %v907_v12  ;;  %v927_v36 = vpack.c.bf16 %v268_v34, %v267_v33  ;;  %v33_v37 = vld [vmem:[%s1579_s0 + $0x68] sm:$0xff]  ;;  %v35_v39 = vld [vmem:[%s1579_s0 + $0x78] sm:$0xff]  ;;  %v269_v40 = vld [vmem:[%s1580_s3 + $0x70] sm:$0xff]  ;;  %v1196_v29 = vand.u32 127, %v423_v28 }
   0xc   :  { %823 = vmatmul.mubr.msk.f32.gmra.mrb[2].mxu0 %vm45_vm0, %v23_v11  ;;  %937 = vmatprep.subr.bf16.mxu1 %v911_v16  ;;  %v270_v41 = vld [vmem:[%s1580_s3 + $0x78] sm:$0xff]  ;;  %v747_v43 = vld [vmem:[%s1581_s2] ss:$0 sm:$0xff] }
   0xd   :  { %825 = vmatprep.mubr.msk.f32.mxu0 %vm45_vm0, %v24_v15  ;;  %910 = vmatpush3.bf16.msra.mxu0 %v907_v12  ;;  %v931_v42 = vpack.c.bf16 %v270_v41, %v269_v40  ;;  %vm425_vm1 = vcmp.lt.s32.totalorder %v1196_v29, 6  ;;  %vm619_vm2 = vcmp.eq.s32.totalorder %v1196_v29, 6 }
   0xe   :  { %912 = vmatprep.subr.bf16.mxu0 %v911_v16 }
   0xf   :  { %945 = vmatpush3.bf16.msra.mxu1 %v911_v16 }
  0x10   :  { %826 = vmatmul.mubr.msk.f32.gmra.mrb[4].mxu0 %vm45_vm0, %v25_v17  ;;  %938 = vmatprep.subr.bf16.mxu1 %v915_v21 }
  0x11   :  { %828 = vmatprep.mubr.msk.f32.mxu0 %vm45_vm0, %v26_v20  ;;  %914 = vmatpush3.bf16.msra.mxu0 %v911_v16 }
  0x12   :  { %916 = vmatprep.subr.bf16.mxu0 %v915_v21 }
  0x13   :  { %946 = vmatpush3.bf16.msra.mxu1 %v915_v21 }
  0x14   :  { %829 = vmatmul.mubr.msk.f32.gmra.mrb[6].mxu0 %vm45_vm0, %v27_v22  ;;  %939 = vmatprep.subr.bf16.mxu1 %v919_v26 }
  0x15   :  { %831 = vmatprep.mubr.msk.f32.mxu0 %vm45_vm0, %v28_v25  ;;  %918 = vmatpush3.bf16.msra.mxu0 %v915_v21 }
  0x16   :  { %920 = vmatprep.subr.bf16.mxu0 %v919_v26 }
  0x17   :  { %947 = vmatpush3.bf16.msra.mxu1 %v919_v26 }
  0x18   :  { %832 = vmatmul.mubr.msk.f32.gmra.mrb[8].mxu0 %vm45_vm0, %v29_v27  ;;  %940 = vmatprep.subr.bf16.mxu1 %v923_v31 }
  0x19   :  { %834 = vmatprep.mubr.msk.f32.mxu0 %vm45_vm0, %v30_v30  ;;  %922 = vmatpush3.bf16.msra.mxu0 %v919_v26  ;;  %v1201_v30 = vld [vmem:[%s1582_s4] ss:$0 sm:$0xff]  ;;  %s1030_s4 = smov 8  }
  0x1a   :  { %924 = vmatprep.subr.bf16.mxu0 %v923_v31 }
  0x1b   :  { %948 = vmatpush3.bf16.msra.mxu1 %v923_v31 }
  0x1c   :  { %835 = vmatmul.mubr.msk.f32.gmra.mrb[10].mxu0 %vm45_vm0, %v31_v32  ;;  %941 = vmatprep.subr.bf16.mxu1 %v927_v36 }
  0x1d   :  { %837 = vmatprep.mubr.msk.f32.mxu0 %vm45_vm0, %v32_v35  ;;  %926 = vmatpush3.bf16.msra.mxu0 %v923_v31 }
  0x1e   :  { %928 = vmatprep.subr.bf16.mxu0 %v927_v36 }
  0x1f   :  { %949 = vmatpush3.bf16.msra.mxu1 %v927_v36 }
  0x20   :  { %838 = vmatmul.mubr.msk.f32.gmra.mrb[12].mxu0 %vm45_vm0, %v33_v37  ;;  %942 = vmatprep.subr.bf16.mxu1 %v931_v42 }
  0x21   :  { %840 = vmatprep.mubr.msk.f32.mxu0 %vm45_vm0, %v34_v38  ;;  %930 = vmatpush3.bf16.msra.mxu0 %v927_v36 }
  0x22   :  { %932 = vmatprep.subr.bf16.mxu0 %v931_v42 }
  0x23   :  { %950 = vmatpush3.bf16.msra.mxu1 %v931_v42 }
  0x24   :  { %841 = vmatmul.mubr.msk.f32.gmra.mrb[14].mxu0 %vm45_vm0, %v35_v39  ;;  %vm729_vm0 = vcmask 917312  }
  0x25   :  { %934 = vmatpush3.bf16.msra.mxu0 %v931_v42 }
  0xdb   :  { %v821_v44 = vpop.f32.mrb[0].mxu0 }
  0xdc   :  { %v166_v45 = vadd.f32 %v821_v44, %v747_v43  ;;  %v160_v46 = vpop.f32.mrb[1].mxu0 }
  0xdd   :  { %v161_v47 = vadd.f32 %v747_v43, %v160_v46 }
  0xde   :  { %v240_v50 = vmax.f32 %v166_v45, 0.0 }
  0xdf   :  { %v239_v48 = vmax.f32 %v161_v47, 0.0  ;;  %v824_v49 = vpop.f32.mrb[2].mxu0 }
  0xe0   :  { %v176_v51 = vadd.f32 %v824_v49, %v747_v43  ;;  %v170_v52 = vpop.f32.mrb[3].mxu0 }
  0xe1   :  { %v171_v53 = vadd.f32 %v747_v43, %v170_v52  ;;  %875 = vmatprep.mubr.f32.mxu0 %v239_v48 }
  0xe2   :  { %876 = vmatmul.mubr.f32.vlgmr.msra.gmra.mrb[16].mxu0 %v240_v50  ;;  %v242_v56 = vmax.f32 %v176_v51, 0.0 }
  0xe3   :  { %v241_v54 = vmax.f32 %v171_v53, 0.0  ;;  %v827_v55 = vpop.f32.mrb[4].mxu0 }
  0xe4   :  { %v186_v57 = vadd.f32 %v827_v55, %v747_v43  ;;  %v180_v58 = vpop.f32.mrb[5].mxu0 }
  0xe5   :  { %v181_v59 = vadd.f32 %v747_v43, %v180_v58  ;;  %878 = vmatprep.mubr.f32.mxu0 %v241_v54 }
  0xe6   :  { %v244_v60 = vmax.f32 %v186_v57, 0.0  ;;  %879 = vmatmul.mubr.f32.gmra.mrb[18].mxu0 %v242_v56 }
  0xe7   :  { %v243_v61 = vmax.f32 %v181_v59, 0.0  ;;  %v830_v62 = vpop.f32.mrb[6].mxu0 }
  0xe8   :  { %v196_v63 = vadd.f32 %v830_v62, %v747_v43  ;;  %v190_v0 = vpop.f32.mrb[7].mxu0 }
  0xe9   :  { %881 = vmatprep.mubr.f32.mxu0 %v243_v61  ;;  %v191_v1 = vadd.f32 %v747_v43, %v190_v0 }
  0xea   :  { %v246_v2 = vmax.f32 %v196_v63, 0.0  ;;  %882 = vmatmul.mubr.f32.gmra.mrb[20].mxu0 %v244_v60 }
  0xeb   :  { %v833_v3 = vpop.f32.mrb[8].mxu0  ;;  %v245_v4 = vmax.f32 %v191_v1, 0.0 }
  0xec   :  { %v206_v5 = vadd.f32 %v833_v3, %v747_v43  ;;  %v200_v6 = vpop.f32.mrb[9].mxu0 }
  0xed   :  { %v201_v7 = vadd.f32 %v747_v43, %v200_v6  ;;  %884 = vmatprep.mubr.f32.mxu1 %v245_v4 }
  0xee   :  { %v248_v8 = vmax.f32 %v206_v5, 0.0  ;;  %885 = vmatmul.mubr.f32.vlgmr.msra.gmra.mrb[0].mxu1 %v246_v2 }
  0xef   :  { %v247_v9 = vmax.f32 %v201_v7, 0.0  ;;  %v836_v10 = vpop.f32.mrb[10].mxu0 }
  0xf0   :  { %v216_v11 = vadd.f32 %v836_v10, %v747_v43  ;;  %v210_v12 = vpop.f32.mrb[11].mxu0 }
  0xf1   :  { %v211_v13 = vadd.f32 %v747_v43, %v210_v12  ;;  %887 = vmatprep.mubr.f32.mxu1 %v247_v9 }
  0xf2   :  { %v250_v14 = vmax.f32 %v216_v11, 0.0  ;;  %888 = vmatmul.mubr.f32.gmra.mrb[2].mxu1 %v248_v8 }
  0xf3   :  { %v249_v15 = vmax.f32 %v211_v13, 0.0  ;;  %v839_v16 = vpop.f32.mrb[12].mxu0 }
  0xf4   :  { %v226_v17 = vadd.f32 %v839_v16, %v747_v43  ;;  %v220_v18 = vpop.f32.mrb[13].mxu0 }
  0xf5   :  { %v221_v19 = vadd.f32 %v747_v43, %v220_v18  ;;  %890 = vmatprep.mubr.f32.mxu1 %v249_v15 }
  0xf6   :  { %v252_v20 = vmax.f32 %v226_v17, 0.0  ;;  %891 = vmatmul.mubr.f32.gmra.mrb[4].mxu1 %v250_v14 }
  0xf7   :  { %v251_v21 = vmax.f32 %v221_v19, 0.0  ;;  %v842_v22 = vpop.f32.mrb[14].mxu0 }
  0xf8   :  { %v236_v23 = vadd.f32 %v842_v22, %v747_v43  ;;  %v230_v24 = vpop.f32.mrb[15].mxu0 }
  0xf9   :  { %v231_v25 = vadd.f32 %v747_v43, %v230_v24  ;;  %893 = vmatprep.mubr.f32.mxu1 %v251_v21 }
  0xfa   :  { %v254_v26 = vmax.f32 %v236_v23, 0.0  ;;  %894 = vmatmul.mubr.f32.gmra.mrb[6].mxu1 %v252_v20 }
  0xfb   :  { %v253_v27 = vmax.f32 %v231_v25, 0.0 }
  0xfd   :  { %896 = vmatprep.mubr.f32.mxu1 %v253_v27 }
  0xfe   :  { %897 = vmatmul.mubr.f32.gmra.mrb[8].mxu1 %v254_v26 }
 0x1b5   :  { %v877_v31 = vpop.f32.mrb[16].mxu0 }
 0x1b6   :  { %v350_v32 = vadd.f32 %v877_v31, %v1201_v30  ;;  %v344_v33 = vpop.f32.mrb[17].mxu0 }
 0x1b7   :  { %v1207_v34 = vadd.f32 %v1201_v30, %v344_v33 }
 0x1b8   :  { %v1211_v35 = vsel %vm619_vm2, %v350_v32, 0.0  ;;  %v1215_v36 = vsel %vm425_vm1, %v350_v32, -1e+30 }
 0x1b9   :  { %v1220_v37 = vsel %vm619_vm2, %v1207_v34, 0.0  ;;  %v880_v38 = vpop.f32.mrb[18].mxu0  ;;  %v446_v39 = vsel %vm442_vm3, %v1215_v36, -inf }
 0x1ba   :  { %v360_v40 = vadd.f32 %v880_v38, %v1201_v30  ;;  %447 = vmax.xlane.f32.xlu0 %v446_v39  ;;  %v354_v41 = vpop.f32.mrb[19].mxu0 }
 0x1bb   :  { %v355_v42 = vadd.f32 %v1201_v30, %v354_v41 }
 0x1bc   :  { %v1228_v43 = vsel %vm619_vm2, %v360_v40, 0.0  ;;  %v1232_v44 = vsel %vm425_vm1, %v360_v40, -1e+30 }
 0x1bd   :  { %v1236_v45 = vsel %vm619_vm2, %v355_v42, 0.0  ;;  %v883_v46 = vpop.f32.mrb[20].mxu0  ;;  %v452_v47 = vsel %vm442_vm3, %v1232_v44, -inf  ;;  %v1242_v48 = vsel %vm425_vm1, %v355_v42, -1e+30 }
 0x1be   :  { %v370_v49 = vadd.f32 %v883_v46, %v1201_v30  ;;  %453 = vmax.xlane.f32.xlu1 %v452_v47  ;;  %v364_v50 = vpop.f32.mrb[21].mxu0  ;;  %v449_v51 = vsel %vm442_vm3, %v1242_v48, -inf }
 0x1bf   :  { %v365_v52 = vadd.f32 %v1201_v30, %v364_v50  ;;  %450 = vmax.xlane.f32.xlu0 %v449_v51 }
 0x1c0   :  { %v1250_v53 = vsel %vm619_vm2, %v370_v49, 0.0  ;;  %v1254_v54 = vsel %vm425_vm1, %v370_v49, -1e+30 }
 0x1c1   :  { %v1258_v55 = vsel %vm619_vm2, %v365_v52, 0.0  ;;  %v886_v56 = vpop.f32.mrb[0].mxu1  ;;  %v1262_v57 = vsel %vm425_vm1, %v365_v52, -1e+30  ;;  %v458_v58 = vsel %vm442_vm3, %v1254_v54, -inf }
 0x1c2   :  { %v380_v59 = vadd.f32 %v886_v56, %v1201_v30  ;;  %v374_v60 = vpop.f32.mrb[1].mxu1  ;;  %v455_v61 = vsel %vm442_vm3, %v1262_v57, -inf }
 0x1c3   :  { %v375_v62 = vadd.f32 %v1201_v30, %v374_v60  ;;  %456 = vmax.xlane.f32.xlu1 %v455_v61  ;;  %459 = vmax.xlane.f32.xlu0 %v458_v58  ;;  %v1381_v58 = vsel %vm425_vm1, %v1207_v34, -1e+30 }
 0x1c4   :  { %v1272_v63 = vsel %vm619_vm2, %v380_v59, 0.0  ;;  %v1276_v0 = vsel %vm425_vm1, %v380_v59, -1e+30  ;;  %v443_v59 = vsel %vm442_vm3, %v1381_v58, -inf }
 0x1c5   :  { %v1280_v1 = vsel %vm619_vm2, %v375_v62, 0.0  ;;  %v889_v2 = vpop.f32.mrb[2].mxu1  ;;  %v1284_v3 = vsel %vm425_vm1, %v375_v62, -1e+30  ;;  %v464_v4 = vsel %vm442_vm3, %v1276_v0, -inf }
 0x1c6   :  { %v390_v5 = vadd.f32 %v889_v2, %v1201_v30  ;;  %v384_v6 = vpop.f32.mrb[3].mxu1  ;;  %v461_v7 = vsel %vm442_vm3, %v1284_v3, -inf }
 0x1c7   :  { %v385_v8 = vadd.f32 %v1201_v30, %v384_v6  ;;  %462 = vmax.xlane.f32.xlu1 %v461_v7  ;;  %465 = vmax.xlane.f32.xlu0 %v464_v4 }
 0x1c8   :  { %v1294_v9 = vsel %vm619_vm2, %v390_v5, 0.0  ;;  %v1298_v10 = vsel %vm425_vm1, %v390_v5, -1e+30 }
 0x1c9   :  { %v1302_v11 = vsel %vm619_vm2, %v385_v8, 0.0  ;;  %v892_v12 = vpop.f32.mrb[4].mxu1  ;;  %v1306_v13 = vsel %vm425_vm1, %v385_v8, -1e+30  ;;  %v470_v14 = vsel %vm442_vm3, %v1298_v10, -inf }
 0x1ca   :  { %v400_v15 = vadd.f32 %v892_v12, %v1201_v30  ;;  %v394_v16 = vpop.f32.mrb[5].mxu1  ;;  %v467_v17 = vsel %vm442_vm3, %v1306_v13, -inf }
 0x1cb   :  { %v395_v18 = vadd.f32 %v1201_v30, %v394_v16  ;;  %468 = vmax.xlane.f32.xlu1 %v467_v17  ;;  %471 = vmax.xlane.f32.xlu0 %v470_v14 }
 0x1cc   :  { %v1316_v19 = vsel %vm619_vm2, %v400_v15, 0.0  ;;  %v1320_v20 = vsel %vm425_vm1, %v400_v15, -1e+30 }
 0x1cd   :  { %v1324_v21 = vsel %vm619_vm2, %v395_v18, 0.0  ;;  %v895_v22 = vpop.f32.mrb[6].mxu1  ;;  %v1328_v23 = vsel %vm425_vm1, %v395_v18, -1e+30  ;;  %v476_v24 = vsel %vm442_vm3, %v1320_v20, -inf }
 0x1ce   :  { %v410_v25 = vadd.f32 %v895_v22, %v1201_v30  ;;  %v404_v26 = vpop.f32.mrb[7].mxu1  ;;  %v473_v27 = vsel %vm442_vm3, %v1328_v23, -inf }
 0x1cf   :  { %v405_v28 = vadd.f32 %v1201_v30, %v404_v26  ;;  %474 = vmax.xlane.f32.xlu1 %v473_v27  ;;  %477 = vmax.xlane.f32.xlu0 %v476_v24 }
 0x1d0   :  { %v1338_v31 = vsel %vm619_vm2, %v410_v25, 0.0  ;;  %v1342_v32 = vsel %vm425_vm1, %v410_v25, -1e+30 }
 0x1d1   :  { %v1346_v33 = vsel %vm619_vm2, %v405_v28, 0.0  ;;  %v898_v38 = vpop.f32.mrb[8].mxu1  ;;  %v1350_v39 = vsel %vm425_vm1, %v405_v28, -1e+30  ;;  %v482_v40 = vsel %vm442_vm3, %v1342_v32, -inf }
 0x1d2   :  { %v420_v41 = vadd.f32 %v898_v38, %v1201_v30  ;;  %v414_v42 = vpop.f32.mrb[9].mxu1  ;;  %v479_v46 = vsel %vm442_vm3, %v1350_v39, -inf }
 0x1d3   :  { %v415_v47 = vadd.f32 %v1201_v30, %v414_v42  ;;  %480 = vmax.xlane.f32.xlu1 %v479_v46  ;;  %483 = vmax.xlane.f32.xlu0 %v482_v40 }
 0x1d4   :  { %v1360_v49 = vsel %vm619_vm2, %v420_v41, 0.0  ;;  %v1364_v50 = vsel %vm425_vm1, %v420_v41, -1e+30 }
 0x1d5   :  { %v1368_v51 = vsel %vm619_vm2, %v415_v47, 0.0  ;;  %v1372_v52 = vsel %vm425_vm1, %v415_v47, -1e+30  ;;  %v488_v30 = vsel %vm442_vm3, %v1364_v50, -inf  ;;  %vm741_vm2 = vcmask 1048512  }
 0x1d6   :  { %v485_v56 = vsel %vm442_vm3, %v1372_v52, -inf }
 0x1d7   :  { %486 = vmax.xlane.f32.xlu1 %v485_v56  ;;  %489 = vmax.xlane.f32.xlu0 %v488_v30 }
 0x1db   :  { %444 = vmax.xlane.f32.xlu1 %v443_v59 }
 0x247   :  { %v448_v60 = vpop.xlane.xlu0 %447 }
 0x248   :  { %v492_v61 = vsub.f32 %v1215_v36, %v448_v60 }
 0x24a   :  { %v509_v62 = vmul.f32 1.442695, %v492_v61 }
 0x24b   :  { %v454_v2 = vpop.xlane.xlu1 %453 }
 0x24c   :  { %966 = vpow2.f32 %v509_v62  ;;  %v494_v4 = vsub.f32 %v1232_v44, %v454_v2  ;;  %v451_v5 = vpop.xlane.xlu0 %450 }
 0x24d   :  { %v493_v6 = vsub.f32 %v1242_v48, %v451_v5 }
 0x24e   :  { %v513_v7 = vmul.f32 1.442695, %v494_v4 }
 0x24f   :  { %v511_v8 = vmul.f32 1.442695, %v493_v6 }
 0x250   :  { %968 = vpow2.f32 %v513_v7  ;;  %v457_v34 = vpop.xlane.xlu1 %456  ;;  %v460_v12 = vpop.xlane.xlu0 %459 }
 0x251   :  { %970 = vpow2.f32 %v511_v8  ;;  %v495_v14 = vsub.f32 %v1262_v57, %v457_v34  ;;  %v496_v15 = vsub.f32 %v1254_v54, %v460_v12 }
 0x253   :  { %v515_v16 = vmul.f32 1.442695, %v495_v14  ;;  %v517_v36 = vmul.f32 1.442695, %v496_v15 }
 0x254   :  { %v463_v17 = vpop.xlane.xlu1 %462  ;;  %v466_v18 = vpop.xlane.xlu0 %465 }
 0x255   :  { %972 = vpow2.f32 %v515_v16  ;;  %v497_v44 = vsub.f32 %v1284_v3, %v463_v17  ;;  %v498_v22 = vsub.f32 %v1276_v0, %v466_v18 }
 0x256   :  { %v1392_v48 = vpop.eup %966  ;;  %974 = vpow2.f32 %v517_v36 }
 0x257   :  { %v519_v24 = vmul.f32 1.442695, %v497_v44  ;;  %v521_v25 = vmul.f32 1.442695, %v498_v22  ;;  %v542_v26 = vsel %vm442_vm3, %v1392_v48, 0.0 }
 0x258   :  { %v469_v57 = vpop.xlane.xlu1 %468  ;;  %543 = vadd.xlane.f32.xlu0 %v542_v26  ;;  %v472_v54 = vpop.xlane.xlu0 %471 }
 0x259   :  { %976 = vpow2.f32 %v519_v24  ;;  %v499_v27 = vsub.f32 %v1306_v13, %v469_v57  ;;  %v500_v28 = vsub.f32 %v1298_v10, %v472_v54 }
 0x25a   :  { %v1398_v38 = vpop.eup %968  ;;  %978 = vpow2.f32 %v521_v25 }
 0x25b   :  { %v1400_v0 = vpop.eup %970  ;;  %v523_v3 = vmul.f32 1.442695, %v499_v27  ;;  %v525_v40 = vmul.f32 1.442695, %v500_v28  ;;  %v548_v41 = vsel %vm442_vm3, %v1398_v38, 0.0 }
 0x25c   :  { %v475_v42 = vpop.xlane.xlu1 %474  ;;  %549 = vadd.xlane.f32.xlu0 %v548_v41  ;;  %v478_v46 = vpop.xlane.xlu0 %477  ;;  %v545_v47 = vsel %vm442_vm3, %v1400_v0, 0.0 }
 0x25d   :  { %980 = vpow2.f32 %v523_v3  ;;  %v501_v13 = vsub.f32 %v1328_v23, %v475_v42  ;;  %v502_v10 = vsub.f32 %v1320_v20, %v478_v46  ;;  %546 = vadd.xlane.f32.xlu1 %v545_v47 }
 0x25e   :  { %982 = vpow2.f32 %v525_v40 }
 0x25f   :  { %v1408_v30 = vpop.eup %972  ;;  %v527_v56 = vmul.f32 1.442695, %v501_v13  ;;  %v529_v59 = vmul.f32 1.442695, %v502_v10 }
 0x260   :  { %v1410_v60 = vpop.eup %974  ;;  %v481_v61 = vpop.xlane.xlu1 %480  ;;  %v551_v2 = vsel %vm442_vm3, %v1408_v30, 0.0 }
 0x261   :  { %v484_v62 = vpop.xlane.xlu0 %483  ;;  %984 = vpow2.f32 %v527_v56  ;;  %v503_v4 = vsub.f32 %v1350_v39, %v481_v61  ;;  %v554_v20 = vsel %vm442_vm3, %v1410_v60, 0.0  ;;  %552 = vadd.xlane.f32.xlu1 %v551_v2 }
 0x262   :  { %v504_v23 = vsub.f32 %v1342_v32, %v484_v62  ;;  %986 = vpow2.f32 %v529_v59  ;;  %555 = vadd.xlane.f32.xlu0 %v554_v20 }
 0x263   :  { %v1418_v5 = vpop.eup %976  ;;  %v531_v6 = vmul.f32 1.442695, %v503_v4 }
 0x264   :  { %v533_v7 = vmul.f32 1.442695, %v504_v23  ;;  %v1420_v8 = vpop.eup %978  ;;  %v487_v34 = vpop.xlane.xlu1 %486  ;;  %v557_v14 = vsel %vm442_vm3, %v1418_v5, 0.0 }
 0x265   :  { %v490_v12 = vpop.xlane.xlu0 %489  ;;  %988 = vpow2.f32 %v531_v6  ;;  %v505_v32 = vsub.f32 %v1372_v52, %v487_v34  ;;  %v560_v15 = vsel %vm442_vm3, %v1420_v8, 0.0  ;;  %558 = vadd.xlane.f32.xlu1 %v557_v14 }
 0x266   :  { %v506_v39 = vsub.f32 %v1364_v50, %v490_v12  ;;  %990 = vpow2.f32 %v533_v7  ;;  %561 = vadd.xlane.f32.xlu0 %v560_v15 }
 0x267   :  { %v1428_v16 = vpop.eup %980  ;;  %v535_v36 = vmul.f32 1.442695, %v505_v32 }
 0x268   :  { %v537_v17 = vmul.f32 1.442695, %v506_v39  ;;  %v1430_v18 = vpop.eup %982  ;;  %v445_v44 = vpop.xlane.xlu1 %444  ;;  %v563_v22 = vsel %vm442_vm3, %v1428_v16, 0.0 }
 0x269   :  { %992 = vpow2.f32 %v535_v36  ;;  %v491_v52 = vsub.f32 %v1381_v58, %v445_v44  ;;  %v566_v50 = vsel %vm442_vm3, %v1430_v18, 0.0  ;;  %564 = vadd.xlane.f32.xlu1 %v563_v22 }
 0x26a   :  { %994 = vpow2.f32 %v537_v17  ;;  %567 = vadd.xlane.f32.xlu0 %v566_v50 }
 0x26b   :  { %v1437_v24 = vpop.eup %984  ;;  %v507_v25 = vmul.f32 1.442695, %v491_v52 }
 0x26c   :  { %v1439_v26 = vpop.eup %986  ;;  %v569_v57 = vsel %vm442_vm3, %v1437_v24, 0.0 }
 0x26d   :  { %996 = vpow2.f32 %v507_v25  ;;  %v572_v54 = vsel %vm442_vm3, %v1439_v26, 0.0  ;;  %570 = vadd.xlane.f32.xlu1 %v569_v57 }
 0x26e   :  { %573 = vadd.xlane.f32.xlu0 %v572_v54 }
 0x26f   :  { %v1445_v58 = vpop.eup %988 }
 0x270   :  { %v1447_v27 = vpop.eup %990  ;;  %v575_v28 = vsel %vm442_vm3, %v1445_v58, 0.0 }
 0x271   :  { %v578_v3 = vsel %vm442_vm3, %v1447_v27, 0.0  ;;  %576 = vadd.xlane.f32.xlu1 %v575_v28 }
 0x272   :  { %579 = vadd.xlane.f32.xlu0 %v578_v3 }
 0x273   :  { %v1453_v40 = vpop.eup %992 }
 0x274   :  { %v1455_v41 = vpop.eup %994  ;;  %v581_v42 = vsel %vm442_vm3, %v1453_v40, 0.0 }
 0x275   :  { %v584_v46 = vsel %vm442_vm3, %v1455_v41, 0.0  ;;  %582 = vadd.xlane.f32.xlu1 %v581_v42 }
 0x276   :  { %585 = vadd.xlane.f32.xlu0 %v584_v46 }
 0x277   :  { %v1461_v47 = vpop.eup %996 }
 0x278   :  { %v539_v13 = vsel %vm442_vm3, %v1461_v47, 0.0 }
 0x279   :  { %540 = vadd.xlane.f32.xlu1 %v539_v13 }
 0x2e5   :  { %v544_v10 = vpop.xlane.xlu0 %543 }
 0x2e6   :  { %998 = vrcp.f32 %v544_v10 }
 0x2e9   :  { %v550_v56 = vpop.xlane.xlu0 %549 }
 0x2ea   :  { %1000 = vrcp.f32 %v550_v56  ;;  %v547_v59 = vpop.xlane.xlu1 %546 }
 0x2eb   :  { %1002 = vrcp.f32 %v547_v59 }
 0x2ee   :  { %v553_v61 = vpop.xlane.xlu1 %552 }
 0x2ef   :  { %v556_v62 = vpop.xlane.xlu0 %555  ;;  %1004 = vrcp.f32 %v553_v61 }
 0x2f0   :  { %v999_v2 = vpop.eup %998  ;;  %1006 = vrcp.f32 %v556_v62 }
 0x2f1   :  { %v590_v4 = vmul.f32 %v999_v2, %v1392_v48 }
 0x2f2   :  { %v559_v23 = vpop.xlane.xlu1 %558 }
 0x2f3   :  { %v562_v20 = vpop.xlane.xlu0 %561  ;;  %1008 = vrcp.f32 %v559_v23  ;;  %v637_v6 = vsel %vm425_vm1, %v590_v4, %v1211_v35 }
 0x2f4   :  { %v1001_v7 = vpop.eup %1000  ;;  %1010 = vrcp.f32 %v562_v20  ;;  %654 = vrot.lane.b32.xlu0 %v637_v6, %s1030_s4 }
 0x2f5   :  { %v1003_v34 = vpop.eup %1002  ;;  %v594_v12 = vmul.f32 %v1001_v7, %v1398_v38 }
 0x2f6   :  { %v565_v14 = vpop.xlane.xlu1 %564  ;;  %v592_v39 = vmul.f32 %v1003_v34, %v1400_v0 }
 0x2f7   :  { %v568_v32 = vpop.xlane.xlu0 %567  ;;  %1012 = vrcp.f32 %v565_v14  ;;  %v639_v48 = vsel %vm425_vm1, %v594_v12, %v1228_v43 }
 0x2f8   :  { %1014 = vrcp.f32 %v568_v32  ;;  %666 = vrot.lane.b32.xlu1 %v639_v48, %s1031_s9  ;;  %v638_v38 = vsel %vm425_vm1, %v592_v39, %v1236_v45 }
 0x2f9   :  { %v1005_v35 = vpop.eup %1004 }
 0x2fa   :  { %v1007_v15 = vpop.eup %1006  ;;  %v571_v36 = vpop.xlane.xlu1 %570  ;;  %v596_v22 = vmul.f32 %v1005_v35, %v1408_v30 }
 0x2fb   :  { %v574_v17 = vpop.xlane.xlu0 %573  ;;  %1016 = vrcp.f32 %v571_v36  ;;  %v598_v44 = vmul.f32 %v1007_v15, %v1410_v60 }
 0x2fc   :  { %1018 = vrcp.f32 %v574_v17  ;;  %660 = vrot.lane.b32.xlu1 %v638_v38, %s1032_s10  ;;  %v640_v45 = vsel %vm425_vm1, %v596_v22, %v1258_v55 }
 0x2fd   :  { %v1009_v43 = vpop.eup %1008  ;;  %v641_v0 = vsel %vm425_vm1, %v598_v44, %v1250_v53 }
 0x2fe   :  { %v1011_v52 = vpop.eup %1010  ;;  %678 = vrot.lane.b32.xlu0 %v641_v0, %s1033_s11  ;;  %v577_v50 = vpop.xlane.xlu1 %576  ;;  %v600_v60 = vmul.f32 %v1009_v43, %v1418_v5 }
 0x2ff   :  { %v580_v25 = vpop.xlane.xlu0 %579  ;;  %1020 = vrcp.f32 %v577_v50  ;;  %v602_v30 = vmul.f32 %v1011_v52, %v1420_v8 }
 0x300   :  { %1022 = vrcp.f32 %v580_v25  ;;  %672 = vrot.lane.b32.xlu1 %v640_v45, %s1034_s12  ;;  %v642_v55 = vsel %vm425_vm1, %v600_v60, %v1280_v1 }
 0x301   :  { %v1013_v57 = vpop.eup %1012  ;;  %v643_v53 = vsel %vm425_vm1, %v602_v30, %v1272_v63 }
 0x302   :  { %v1015_v54 = vpop.eup %1014  ;;  %690 = vrot.lane.b32.xlu0 %v643_v53, %s1035_s13  ;;  %v583_v28 = vpop.xlane.xlu1 %582  ;;  %v604_v8 = vmul.f32 %v1013_v57, %v1428_v16 }
 0x303   :  { %v586_v3 = vpop.xlane.xlu0 %585  ;;  %1024 = vrcp.f32 %v583_v28  ;;  %v606_v5 = vmul.f32 %v1015_v54, %v1430_v18 }
 0x304   :  { %1026 = vrcp.f32 %v586_v3  ;;  %684 = vrot.lane.b32.xlu1 %v642_v55, %s1036_s14  ;;  %v644_v1 = vsel %vm425_vm1, %v604_v8, %v1302_v11 }
 0x305   :  { %v1017_v42 = vpop.eup %1016  ;;  %v645_v63 = vsel %vm425_vm1, %v606_v5, %v1294_v9 }
 0x306   :  { %v1019_v46 = vpop.eup %1018  ;;  %702 = vrot.lane.b32.xlu0 %v645_v63, %s1037_s15  ;;  %v541_v13 = vpop.xlane.xlu1 %540  ;;  %v608_v16 = vmul.f32 %v1017_v42, %v1437_v24 }
 0x307   :  { %1028 = vrcp.f32 %v541_v13  ;;  %v610_v18 = vmul.f32 %v1019_v46, %v1439_v26 }
 0x308   :  { %696 = vrot.lane.b32.xlu1 %v644_v1, %s1038_s16  ;;  %v646_v59 = vsel %vm425_vm1, %v608_v16, %v1324_v21 }
 0x309   :  { %v1021_v10 = vpop.eup %1020  ;;  %v647_v9 = vsel %vm425_vm1, %v610_v18, %v1316_v19 }
 0x30a   :  { %v1023_v56 = vpop.eup %1022  ;;  %714 = vrot.lane.b32.xlu0 %v647_v9, %s1039_s17  ;;  %v612_v26 = vmul.f32 %v1021_v10, %v1445_v58 }
 0x30b   :  { %v614_v11 = vmul.f32 %v1023_v56, %v1447_v27 }
 0x30c   :  { %708 = vrot.lane.b32.xlu1 %v646_v59, %s1040_s18  ;;  %v648_v19 = vsel %vm425_vm1, %v612_v26, %v1346_v33 }
 0x30d   :  { %v1025_v24 = vpop.eup %1024  ;;  %v649_v61 = vsel %vm425_vm1, %v614_v11, %v1338_v31 }
 0x30e   :  { %v1027_v62 = vpop.eup %1026  ;;  %726 = vrot.lane.b32.xlu0 %v649_v61, %s1041_s19  ;;  %v616_v27 = vmul.f32 %v1025_v24, %v1453_v40 }
 0x30f   :  { %v618_v21 = vmul.f32 %v1027_v62, %v1455_v41 }
 0x310   :  { %720 = vrot.lane.b32.xlu1 %v648_v19, %s1042_s20  ;;  %v650_v4 = vsel %vm425_vm1, %v616_v27, %v1368_v51 }
 0x311   :  { %v1029_v58 = vpop.eup %1028  ;;  %v651_v2 = vsel %vm425_vm1, %v618_v21, %v1360_v49 }
 0x312   :  { %v588_v31 = vmul.f32 %v1029_v58, %v1461_v47  ;;  %738 = vrot.lane.b32.xlu0 %v651_v2, %s1043_s21 }
 0x314   :  { %732 = vrot.lane.b32.xlu1 %v650_v4, %s1044_s22  ;;  %v636_v33 = vsel %vm425_vm1, %v588_v31, %v1220_v37  ;;  %vm735_vm1 = vcmask 982912  }
 0x315   :  { %652 = vst.msk [vmem:[%s1583_s5] sm:$0xff] %vm442_vm3, %v636_v33 }
 0x366   :  { %v655_v49 = vpop.permute.xlu0 %654 }
 0x367   :  { %658 = vst.msk [vmem:[%s1583_s5] sm:$0xff] %vm657_vm4, %v655_v49 }
 0x36a   :  { %v667_v40 = vpop.permute.xlu1 %666 }
 0x36e   :  { %v661_v51 = vpop.permute.xlu1 %660 }
 0x36f   :  { %664 = vst.msk [vmem:[%s1583_s5] sm:$0xff] %vm663_vm5, %v661_v51 }
 0x370   :  { %v679_v29 = vpop.permute.xlu0 %678  ;;  %670 = vst.msk [vmem:[%s1583_s5] sm:$0xff] %vm669_vm6, %v667_v40 }
 0x372   :  { %v673_v37 = vpop.permute.xlu1 %672 }
 0x373   :  { %676 = vst.msk [vmem:[%s1583_s5] sm:$0xff] %vm675_vm7, %v673_v37 }
 0x374   :  { %v691_v41 = vpop.permute.xlu0 %690  ;;  %682 = vst.msk [vmem:[%s1583_s5] sm:$0xff] %vm681_vm8, %v679_v29 }
 0x376   :  { %v685_v47 = vpop.permute.xlu1 %684 }
 0x377   :  { %688 = vst.msk [vmem:[%s1583_s5] sm:$0xff] %vm687_vm9, %v685_v47 }
 0x378   :  { %v703_v23 = vpop.permute.xlu0 %702  ;;  %694 = vst.msk [vmem:[%s1583_s5] sm:$0xff] %vm693_vm10, %v691_v41 }
 0x37a   :  { %v697_v20 = vpop.permute.xlu1 %696 }
 0x37b   :  { %700 = vst.msk [vmem:[%s1583_s5] sm:$0xff] %vm699_vm11, %v697_v20 }
 0x37c   :  { %v715_v6 = vpop.permute.xlu0 %714  ;;  %706 = vst.msk [vmem:[%s1583_s5] sm:$0xff] %vm705_vm12, %v703_v23 }
 0x37e   :  { %v709_v7 = vpop.permute.xlu1 %708 }
 0x37f   :  { %712 = vst.msk [vmem:[%s1583_s5] sm:$0xff] %vm711_vm13, %v709_v7 }
 0x380   :  { %718 = vst.msk [vmem:[%s1583_s5] sm:$0xff] %vm717_vm14, %v715_v6  ;;  %v727_v34 = vpop.permute.xlu0 %726 }
 0x382   :  { %v721_v12 = vpop.permute.xlu1 %720 }
 0x383   :  { %724 = vst.msk [vmem:[%s1583_s5] sm:$0xff] %vm723_vm15, %v721_v12 }
 0x384   :  { %730 = vst.msk [vmem:[%s1583_s5] sm:$0xff] %vm729_vm0, %v727_v34  ;;  %v739_v32 = vpop.permute.xlu0 %738 }
 0x386   :  { %v733_v14 = vpop.permute.xlu1 %732 }
 0x387   :  { %736 = vst.msk [vmem:[%s1583_s5] sm:$0xff] %vm735_vm1, %v733_v14 }
 0x388   :  { %742 = vst.msk [vmem:[%s1583_s5] sm:$0xff] %vm741_vm2, %v739_v32 }

</bundles_post_ra>
